<compile_context>
chip_gen: v7x
topology: tpu7x:2x2x1
jax: 0.10.0
libtpu: 0.0.40
codegen_flags: <defaults>
</compile_context>

<pallas_src>
import jax
import jax.numpy as jnp
from jax.experimental import pallas as pl
from jax.experimental.pallas import tpu as pltpu


_INT8_MIN = -128.0
_INT8_MAX = 127.0


def _fake_quant_kernel(scale_ref, x_ref, o_ref):
    # scale_ref lives in SMEM: [x_range, 1/x_range].  SMEM scalar reads are
    # free for a mem-bound kernel and avoid retracing on new range values.
    x_range = scale_ref[0]
    inv_range = scale_ref[1]
    # Upcast in-register: required on v5e (no bf16 VALU), free elsewhere.
    x = x_ref[...].astype(jnp.float32)
    y = jnp.clip(jnp.round(x * x_range), _INT8_MIN, _INT8_MAX) * inv_range
    o_ref[...] = y.astype(o_ref.dtype)


def _fake_quant_2d(x2d, scales):
    """Run the Pallas kernel on a lane-dense (rows, lane) slab."""
    rows, lane = x2d.shape
    itemsize = x2d.dtype.itemsize

    # Dtype-aware block sizing: ~4 MiB per block buffer.  Double-buffered
    # input + output => ~16 MiB of VMEM in flight, under the scoped limit
    # requested below on every generation (v5e/v6e: 128 MiB, v7x: 64 MiB).
    target_bytes = 4 * 1024 * 1024
    target_elems = max(1, target_bytes // itemsize)
    block_rows = max(1, target_elems // lane)

    # Tensors bigger than ~1 MiB: guarantee >= 4 grid steps so the pipeline
    # (prefetch/compute/writeback overlap) engages and the parallel axis can
    # be sharded across both v7x TensorCores.
    total_bytes = rows * lane * itemsize
    if total_bytes > (1 << 20):
        block_rows = min(block_rows, pl.cdiv(rows, 4))

    if block_rows >= rows:
        block_rows = rows                          # single block == full array dims
    else:
        # Keep (8,128) / bf16 / int8 sublane tiling happy.
        block_rows = max(32, (block_rows // 32) * 32)
        block_rows = min(block_rows, rows)

    grid = (pl.cdiv(rows, block_rows),)

    # NOTE: input_output_aliases={1: 0} would quantize in place, but without
    # buffer donation at a jit boundary XLA inserts a defensive copy, so the
    # alias is intentionally not applied here.
    return pl.pallas_call(
        _fake_quant_kernel,
        out_shape=jax.ShapeDtypeStruct((rows, lane), x2d.dtype),
        grid=grid,
        in_specs=[
            pl.BlockSpec(memory_space=pltpu.MemorySpace.SMEM),      # [x_range, 1/x_range]
            pl.BlockSpec((block_rows, lane), lambda i: (i, 0)),
        ],
        out_specs=pl.BlockSpec((block_rows, lane), lambda i: (i, 0)),
        compiler_params=pltpu.CompilerParams(
            dimension_semantics=("parallel",),     # megacore-shard the row axis
            vmem_limit_bytes=32 * 1024 * 1024,     # explicit headroom, safe on v7x (64 MiB)
        ),
    )(scales, x2d)


def weight_quantizer(x, x_range):
    """Fake int8 quantization applied elementwise to `x` (any shape/dtype)."""
    orig_shape = x.shape
    dtype = x.dtype

    x_range_f = jnp.asarray(x_range, jnp.float32)
    inv_range_f = 1.0 / x_range_f
    scales = jnp.stack([x_range_f, inv_range_f])   # -> SMEM inside the kernel

    flat = x.reshape(-1)
    n = flat.shape[0]
    if n == 0:
        return x

    # Widest lane-dense width that divides n; otherwise lane=128 bulk + a
    # (< 128)-element jnp tail (no full-tensor pad / extra HBM passes).
    lane = 128
    for cand in (1024, 512, 256, 128):
        if n % cand == 0:
            lane = cand
            break

    rem = n % lane
    bulk_n = n - rem

    pieces = []
    if bulk_n > 0:
        x2d = flat[:bulk_n].reshape(bulk_n // lane, lane)
        pieces.append(_fake_quant_2d(x2d, scales).reshape(-1))
    if rem > 0:
        tail = flat[bulk_n:].astype(jnp.float32)
        tail = jnp.clip(jnp.round(tail * x_range_f), _INT8_MIN, _INT8_MAX)
        pieces.append((tail * inv_range_f).astype(dtype))

    out = pieces[0] if len(pieces) == 1 else jnp.concatenate(pieces)
    return out.reshape(orig_shape)


def _reference(x, x_range):
    y = jnp.round(x.astype(jnp.float32) * x_range)
    y = jnp.clip(y, -128.0, 127.0)
    return (y * (1.0 / x_range)).astype(x.dtype)


if __name__ == "__main__":
    key = jax.random.PRNGKey(0)
    # Small conv-weight-like tensor (NCHW), consistent with the module usage.
    x = jax.random.normal(key, (2, 4, 16, 16), dtype=jnp.float32)
    x_range = 64.0  # WeightQuantizer.__init__ argument

    out = weight_quantizer(x, x_range)
    out = jax.block_until_ready(out)

    ref = _reference(x, x_range)
    assert out.shape == x.shape and out.dtype == x.dtype
    assert jnp.allclose(out, ref, atol=1e-6), "mismatch vs reference"

    # Ragged path exercise (bulk + tail split), tiny so it costs nothing.
    x_odd = jax.random.normal(jax.random.PRNGKey(1), (3, 5, 7), dtype=jnp.float32)
    out_odd = jax.block_until_ready(weight_quantizer(x_odd, x_range))
    assert jnp.allclose(out_odd, _reference(x_odd, x_range), atol=1e-6)

    print("KERNEL_OK")
</pallas_src>

<mosaic_0001>
module attributes {stable_mosaic.version = 11 : i64} {
  func.func @_fake_quant_kernel(%arg0: i32, %arg1: memref<2xf32, #tpu.memory_space<smem>>, %arg2: memref<2x1024xf32, #tpu.memory_space<vmem>>, %arg3: memref<2x1024xf32, #tpu.memory_space<vmem>>) attributes {dimension_semantics = [#tpu.dimension_semantics<parallel>], iteration_bounds = array<i64: 1>, scalar_prefetch = 0 : i64, scratch_operands = 0 : i64, tpu.core_type = #tpu.core_type<tc>, window_params = [{transform_indices = @transform_0, window_bounds = array<i64: 2>}, {transform_indices = @transform_1, window_bounds = array<i64: 2, 1024>}, {transform_indices = @transform_2, window_bounds = array<i64: 2, 1024>}]} {
    %c0 = arith.constant 0 : index
    %0 = memref.load %arg1[%c0] : memref<2xf32, #tpu.memory_space<smem>>
    %c1 = arith.constant 1 : index
    %1 = memref.load %arg1[%c1] : memref<2xf32, #tpu.memory_space<smem>>
    %c0_0 = arith.constant 0 : index
    %c0_1 = arith.constant 0 : index
    %2 = vector.load %arg2[%c0_0, %c0_1] : memref<2x1024xf32, #tpu.memory_space<vmem>>, vector<2x1024xf32>
    %3 = vector.broadcast %0 : f32 to vector<2x1024xf32>
    %4 = arith.mulf %2, %3 : vector<2x1024xf32>
    %5 = math.roundeven %4 : vector<2x1024xf32>
    %cst = arith.constant -1.280000e+02 : f32
    %cst_2 = arith.constant 1.270000e+02 : f32
    %6 = vector.broadcast %cst : f32 to vector<2x1024xf32>
    %7 = arith.maximumf %6, %5 : vector<2x1024xf32>
    %8 = vector.broadcast %cst_2 : f32 to vector<2x1024xf32>
    %9 = arith.minimumf %8, %7 : vector<2x1024xf32>
    %10 = vector.broadcast %1 : f32 to vector<2x1024xf32>
    %11 = arith.mulf %9, %10 : vector<2x1024xf32>
    %c0_3 = arith.constant 0 : index
    %c0_4 = arith.constant 0 : index
    %12 = vector.load %arg3[%c0_3, %c0_4] : memref<2x1024xf32, #tpu.memory_space<vmem>>, vector<2x1024xf32>
    tpu.vector_store %arg3[%c0_3, %c0_4], %11 {strides = array<i32>} : memref<2x1024xf32, #tpu.memory_space<vmem>>, vector<2x1024xf32>,
    return
  }
  func.func @transform_0(%arg0: i32) -> i32 {
    %c0_i32 = arith.constant 0 : i32
    %c0_i32_0 = arith.constant 0 : i32
    return %c0_i32 : i32
  }
  func.func @transform_1(%arg0: i32) -> (i32, i32) {
    %c0_i32 = arith.constant 0 : i32
    %c0_i32_0 = arith.constant 0 : i32
    return %arg0, %c0_i32 : i32, i32
  }
  func.func @transform_2(%arg0: i32) -> (i32, i32) {
    %c0_i32 = arith.constant 0 : i32
    %c0_i32_0 = arith.constant 0 : i32
    return %arg0, %c0_i32 : i32, i32
  }
}

</mosaic_0001>

<bundles_post_ra>
// kernel: tpu_custom_call.1
= control target key start
LH: loop header
LB: loop body
LE: loop exit
PB: predicated region body
PF: predicated region fallthrough
CT: control target
= control target key end

     0   :  { %7 = vsyncpa [#allocation5], 0  ;;  %s189_s0 = inlined_call_operand.hbm [shape: f32[2], index: 0, kind: input, shape index: {}]   ;;  %s190_s1 = inlined_call_operand.hbm [shape: f32[2,1024], index: 1, kind: input, shape index: {}]   ;;  %s191_s2 = inlined_call_operand.hbm [shape: f32[2,1024], index: 2, kind: output, shape index: {}]  }
   0x1   :  { %8 = vsyncpa [#allocation3], 0 }
   0x2   :  { %9 = vsyncpa [#allocation4], 0  ;;  %s75_s11 = scalar_lea.hbm %s189_s0, 16 }
   0x3   :  { %p76_p0 = scmp.ne.s32.totalorder %s189_s0, %s75_s11  ;;  %p79_p1 = scmp.lt.u32.totalorder %s75_s11, %s189_s0 }
   0x5   :  { %p81_p2 = pnand %p79_p1, %p76_p0 }
   0x7   :  { %84 = shalt.err (!%p81_p2)
}
   0x8   :  { %s135_s16 = smov [#allocation2]   ;;  %s136_s19 = smov [#allocation6]  }
   0x9   :  { %17 = dma.hbm_to_smem %s189_s0, 16, %s135_s16, [#allocation5]  }
   0xa   :  { %s24_s20 = sshll.u32 %s136_s19, 4  ;;  %s85_s23 = scalar_lea.hbm %s190_s1, 256  ;;  %s25_s20 = int_to_ptr.vmem [resolvable:$true] %s24_s20 }
   0xb   :  { %p86_p3 = scmp.ne.s32.totalorder %s190_s1, %s85_s23  ;;  %p89_p4 = scmp.lt.u32.totalorder %s85_s23, %s190_s1 }
   0xd   :  { %p91_p5 = pnand %p89_p4, %p86_p3 }
   0xf   :  { %94 = shalt.err (!%p91_p5)
}
  0x10   :  { %s95_s28 = scalar_lea.vmem %s25_s20, 256  ;;  %p100_p7 = scmp.lt.s32.totalorder %s25_s20, %s25_s20 }
  0x11   :  { %p96_p6 = scmp.ne.s32.totalorder %s25_s20, %s95_s28  ;;  %p101_p8 = scmp.lt.s32.totalorder %s95_s28, %s95_s28 }
  0x13   :  { %p102_p9 = por %p101_p8, %p100_p7 }
  0x15   :  { %p103_p10 = pnand %p102_p9, %p96_p6 }
  0x17   :  { %106 = shalt.err (!%p103_p10)
}
  0x18   :  { %27 = dma.hbm_to_vmem [thread:$0]  %s190_s1, 256, %s25_s20, [#allocation3]  }
  0x19   :  { %129 = dma.done.wait [#allocation5], 16  }
  0x1a   :  { %130 = vsyncadd [#allocation5], 4294967280 }
  0x1b   :  { %131 = dma.done.wait [#allocation3], 256  }
  0x1c   :  { %132 = vsyncadd [#allocation3], 4294967040 }
  0x1d   :  { %34 = sfence }
  0x1e   :  { %s35_s30 = sld [smem:[#allocation2]]  ;;  %s69_s3 = sld [smem:[#allocation2 + $0x1]]  ;;  %v37_v0 = vld [vmem:[#allocation6] sm:$0xff]  ;;  %v38_v1 = vld [vmem:[#allocation6 + $0x8] sm:$0xff] }
  0x1f   :  { %s137_s4 = smov [#allocation7]  }
  0x20   :  { %s59_s5 = sshll.u32 %s137_s4, 4  ;;  %s60_s5 = int_to_ptr.vmem [resolvable:$true] %s59_s5 }
  0x21   :  { %s107_s1 = scalar_lea.vmem %s60_s5, 256  ;;  %p112_p12 = scmp.lt.s32.totalorder %s60_s5, %s60_s5 }
  0x22   :  { %p108_p11 = scmp.ne.s32.totalorder %s60_s5, %s107_s1  ;;  %p113_p13 = scmp.lt.s32.totalorder %s107_s1, %s107_s1 }
  0x24   :  { %v39_v2 = vstv %s35_s30  ;;  %v48_v9 = vstv %s69_s3  ;;  %p114_p0 = por %p113_p13, %p112_p12 }
  0x25   :  { %v40_v3 = vmul.f32 %v39_v2, %v37_v0  ;;  %v41_v4 = vmul.f32 %v39_v2, %v38_v1 }
  0x26   :  { %p115_p1 = pnand %p114_p0, %p108_p11 }
  0x27   :  { %v70_v5 = vround.rtne.f32 %v40_v3  ;;  %v71_v6 = vround.rtne.f32 %v41_v4 }
  0x29   :  { %v44_v7 = vmax.f32 %v70_v5, -128.0  ;;  %v45_v8 = vmax.f32 %v71_v6, -128.0 }
  0x2b   :  { %v46_v10 = vmin.f32 %v44_v7, 127.0  ;;  %v47_v11 = vmin.f32 %v45_v8, 127.0 }
  0x2d   :  { %v49_v12 = vmul.f32 %v48_v9, %v46_v10  ;;  %v50_v13 = vmul.f32 %v48_v9, %v47_v11 }
  0x2f   :  { %51 = vst [vmem:[#allocation7] sm:$0xff] %v49_v12  ;;  %52 = vst [vmem:[#allocation7 + $0x8] sm:$0xff] %v50_v13 }
  0x30   :  { %118 = shalt.err (!%p115_p1)
}
  0x31   :  { %s119_s8 = scalar_lea.hbm %s191_s2, 256 }
  0x32   :  { %p120_p2 = scmp.ne.s32.totalorder %s191_s2, %s119_s8  ;;  %p123_p3 = scmp.lt.u32.totalorder %s119_s8, %s191_s2 }
  0x34   :  { %p125_p4 = pnand %p123_p3, %p120_p2 }
  0x36   :  { %128 = shalt.err (!%p125_p4)
}
  0x37   :  { %62 = dma.vmem_to_hbm [thread:$0]  %s60_s5, 256, %s191_s2, [#allocation4]  }
  0x38   :  { %133 = dma.done.wait [#allocation4], 256  }
  0x39   :  { %134 = vsyncadd [#allocation4], 4294967040 }
  0x3a   :  { %66 = vsyncpa [#allocation3], 1 }
  0x3b   :  { %67 = vsyncpa [#allocation4], 1 }
  0x3c   :  { %68 = vsyncpa [#allocation5], 1 }

</bundles_post_ra>
